<compile_context>
chip_gen: v7x
topology: tpu7x:2x2x1
jax: 0.10.0
libtpu: 0.0.40
codegen_flags: <defaults>
</compile_context>

<pallas_src>
import functools

import jax
import jax.numpy as jnp
from jax import lax
from jax.experimental import pallas as pl
from jax.experimental.pallas import tpu as pltpu


def _not_idx2_mask(shape, tile_rows, cols, d):
    """mask[r, c] = ((global_row*cols + c) % d) != 2 for the current block."""
    row = pl.program_id(0) * tile_rows + lax.broadcasted_iota(jnp.int32, shape, 0)
    col = lax.broadcasted_iota(jnp.int32, shape, 1)
    # (row*cols + col) % d, computed with small operands to avoid overflow.
    flat_mod = ((row % d) * (cols % d) + col) % d
    return flat_mod != 2


def _combined_loss_elem_kernel(x_ref, t_ref, o_ref, *, d, tile_rows, cols):
    x = x_ref[...].astype(jnp.float32)
    t = t_ref[...].astype(jnp.float32)
    diff = x - t
    mask = _not_idx2_mask(diff.shape, tile_rows, cols, d)
    out = jnp.where(mask, diff * diff, 2.0 - 2.0 * jnp.cos(diff))
    o_ref[...] = out.astype(o_ref.dtype)


def _combined_loss_reduce_kernel(x_ref, t_ref, p_ref, *, d, tile_rows, cols):
    x = x_ref[...].astype(jnp.float32)
    t = t_ref[...].astype(jnp.float32)
    diff = x - t
    mask = _not_idx2_mask(diff.shape, tile_rows, cols, d)
    val = jnp.where(mask, diff * diff, 2.0 - 2.0 * jnp.cos(diff))
    # One (8,128) block per grid step holding this block's partial sum
    # (broadcast; wrapper reads [i, 0, 0]).  Zero-padding contributes 0 to
    # both branches (diff == 0), so no extra masking is needed.
    p_ref[...] = jnp.full((1, 8, 128), jnp.sum(val), dtype=jnp.float32)


def _layout(n):
    """Pick a lane-dense 2D layout and row-tile for n total elements."""
    cols = 1024 if n >= 8 * 1024 else 128           # lane axis: multiple of 128
    rows = pl.cdiv(n, cols)
    tile_rows = min(256, pl.cdiv(rows, 8) * 8)      # <= 1 MiB f32 per array/block
    padded_rows = pl.cdiv(rows, tile_rows) * tile_rows
    return cols, tile_rows, padded_rows


def combined_loss(inputs, targets, reduction="none"):
    assert inputs.shape == targets.shape
    assert inputs.ndim == 3 and inputs.shape[-1] >= 3, "needs a last-dim index 2"
    B, S, D = inputs.shape
    n = B * S * D
    cols, tile_rows, padded_rows = _layout(n)
    padded_n = padded_rows * cols
    grid = (padded_rows // tile_rows,)

    def to2d(a):
        flat = a.reshape(-1)
        if padded_n != n:
            flat = jnp.pad(flat, (0, padded_n - n))   # zero pad -> 0 loss contribution
        return flat.reshape(padded_rows, cols)

    x2, t2 = to2d(inputs), to2d(targets)
    in_specs = [
        pl.BlockSpec((tile_rows, cols), lambda i: (i, 0)),
        pl.BlockSpec((tile_rows, cols), lambda i: (i, 0)),
    ]
    cparams = pltpu.CompilerParams(
        dimension_semantics=("parallel",),
        vmem_limit_bytes=32 << 20,
    )

    if reduction == "none":
        kernel = functools.partial(
            _combined_loss_elem_kernel, d=D, tile_rows=tile_rows, cols=cols)
        out2 = pl.pallas_call(
            kernel,
            out_shape=jax.ShapeDtypeStruct((padded_rows, cols), inputs.dtype),
            grid_spec=pltpu.PrefetchScalarGridSpec(
                num_scalar_prefetch=0,
                grid=grid,
                in_specs=in_specs,
                out_specs=pl.BlockSpec((tile_rows, cols), lambda i: (i, 0)),
            ),
            compiler_params=cparams,
        )(x2, t2)
        return out2.reshape(-1)[:n].reshape(B, S, D)

    # Fused reduction path: per-block partial sums (f32), tiny XLA reduce.
    kernel = functools.partial(
        _combined_loss_reduce_kernel, d=D, tile_rows=tile_rows, cols=cols)
    partials = pl.pallas_call(
        kernel,
        out_shape=jax.ShapeDtypeStruct((grid[0], 8, 128), jnp.float32),
        grid_spec=pltpu.PrefetchScalarGridSpec(
            num_scalar_prefetch=0,
            grid=grid,
            in_specs=in_specs,
            out_specs=pl.BlockSpec((1, 8, 128), lambda i: (i, 0, 0)),
        ),
        compiler_params=cparams,
    )(x2, t2)
    total = jnp.sum(partials[:, 0, 0])
    if reduction == "sum":
        return total.astype(inputs.dtype)
    if reduction == "mean":
        return (total / n).astype(inputs.dtype)
    raise ValueError(f"unknown reduction: {reduction}")


def _reference(inputs, targets):
    # pure-JAX reference mirroring the PyTorch forward
    mask = jnp.ones(targets.shape, dtype=bool)
    mask = mask.at[:, :, 2].set(False)
    diff = (inputs - targets).astype(jnp.float32)
    return jnp.where(mask, diff ** 2, 2.0 - 2.0 * jnp.cos(diff))


if __name__ == "__main__":
    key = jax.random.PRNGKey(0)

    # Case 1: the small shape from the module's typical usage.
    k1, k2, k3, k4 = jax.random.split(key, 4)
    B, S, D = 2, 8, 8
    x = jax.random.normal(k1, (B, S, D), dtype=jnp.float32)
    t = jax.random.normal(k2, (B, S, D), dtype=jnp.float32)

    out = jax.block_until_ready(combined_loss(x, t, reduction="none"))
    ref = _reference(x, t)
    assert out.shape == (B, S, D)
    assert jnp.allclose(out, ref, atol=1e-5, rtol=1e-5)

    s = jax.block_until_ready(combined_loss(x, t, reduction="sum"))
    m = jax.block_until_ready(combined_loss(x, t, reduction="mean"))
    assert jnp.allclose(s, jnp.sum(ref), rtol=1e-4, atol=1e-3)
    assert jnp.allclose(m, jnp.mean(ref), rtol=1e-4, atol=1e-5)

    # Case 2: a shape that exercises the 1024-lane path and non-trivial D.
    B2, S2, D2 = 2, 64, 80
    x2 = jax.random.normal(k3, (B2, S2, D2), dtype=jnp.float32)
    t2 = jax.random.normal(k4, (B2, S2, D2), dtype=jnp.float32)
    out2 = jax.block_until_ready(combined_loss(x2, t2, reduction="none"))
    ref2 = _reference(x2, t2)
    assert jnp.allclose(out2, ref2, atol=1e-5, rtol=1e-5)
    s2 = jax.block_until_ready(combined_loss(x2, t2, reduction="sum"))
    assert jnp.allclose(s2, jnp.sum(ref2), rtol=1e-4, atol=1e-2)

    print("KERNEL_OK")
</pallas_src>

<mosaic_0001>
module attributes {stable_mosaic.version = 11 : i64} {
  func.func @_combined_loss_elem_kernel(%arg0: i32, %arg1: memref<8x128xf32, #tpu.memory_space<vmem>>, %arg2: memref<8x128xf32, #tpu.memory_space<vmem>>, %arg3: memref<8x128xf32, #tpu.memory_space<vmem>>) attributes {dimension_semantics = [#tpu.dimension_semantics<parallel>], iteration_bounds = array<i64: 1>, scalar_prefetch = 0 : i64, scratch_operands = 0 : i64, tpu.core_type = #tpu.core_type<tc>, window_params = [{transform_indices = @transform_0, window_bounds = array<i64: 8, 128>}, {transform_indices = @transform_1, window_bounds = array<i64: 8, 128>}, {transform_indices = @transform_2, window_bounds = array<i64: 8, 128>}]} {
    %c0 = arith.constant 0 : index
    %c0_0 = arith.constant 0 : index
    %0 = vector.load %arg1[%c0, %c0_0] : memref<8x128xf32, #tpu.memory_space<vmem>>, vector<8x128xf32>
    %c0_1 = arith.constant 0 : index
    %c0_2 = arith.constant 0 : index
    %1 = vector.load %arg2[%c0_1, %c0_2] : memref<8x128xf32, #tpu.memory_space<vmem>>, vector<8x128xf32>
    %2 = arith.subf %0, %1 : vector<8x128xf32>
    %c8_i32 = arith.constant 8 : i32
    %3 = arith.muli %arg0, %c8_i32 : i32
    %4 = tpu.iota {dimensions = array<i32: 0>} : vector<8x128xi32>
    %5 = vector.broadcast %3 : i32 to vector<8x128xi32>
    %6 = arith.addi %5, %4 : vector<8x128xi32>
    %7 = tpu.iota {dimensions = array<i32: 1>} : vector<8x128xi32>
    %c8_i32_3 = arith.constant 8 : i32
    %c0_i32 = arith.constant 0 : i32
    %8 = arith.cmpi eq, %c8_i32_3, %c0_i32 : i32
    %c1_i32 = arith.constant 1 : i32
    %9 = arith.select %8, %c1_i32, %c8_i32_3 : i32
    %10 = vector.broadcast %9 : i32 to vector<8x128xi32>
    %11 = arith.remsi %6, %10 : vector<8x128xi32>
    %c0_i32_4 = arith.constant 0 : i32
    %12 = vector.broadcast %c0_i32_4 : i32 to vector<8x128xi32>
    %13 = arith.cmpi ne, %11, %12 : vector<8x128xi32>
    %c0_i32_5 = arith.constant 0 : i32
    %14 = vector.broadcast %c0_i32_5 : i32 to vector<8x128xi32>
    %15 = arith.cmpi slt, %11, %14 : vector<8x128xi32>
    %c0_i32_6 = arith.constant 0 : i32
    %16 = arith.cmpi slt, %9, %c0_i32_6 : i32
    %17 = vector.broadcast %16 : i1 to vector<8x128xi1>
    %18 = vector.broadcast %17 : vector<8x128xi1> to vector<8x128xi1>
    %19 = arith.xori %15, %18 : vector<8x128xi1>
    %20 = arith.andi %19, %13 : vector<8x128xi1>
    %21 = vector.broadcast %9 : i32 to vector<8x128xi32>
    %22 = arith.addi %11, %21 : vector<8x128xi32>
    %23 = arith.select %20, %22, %11 : vector<8x128xi1>, vector<8x128xi32>
    %c0_i32_7 = arith.constant 0 : i32
    %24 = vector.broadcast %c0_i32_7 : i32 to vector<8x128xi32>
    %25 = arith.muli %23, %24 : vector<8x128xi32>
    %26 = arith.addi %25, %7 : vector<8x128xi32>
    %c8_i32_8 = arith.constant 8 : i32
    %c0_i32_9 = arith.constant 0 : i32
    %27 = arith.cmpi eq, %c8_i32_8, %c0_i32_9 : i32
    %c1_i32_10 = arith.constant 1 : i32
    %28 = arith.select %27, %c1_i32_10, %c8_i32_8 : i32
    %29 = vector.broadcast %28 : i32 to vector<8x128xi32>
    %30 = arith.remsi %26, %29 : vector<8x128xi32>
    %c0_i32_11 = arith.constant 0 : i32
    %31 = vector.broadcast %c0_i32_11 : i32 to vector<8x128xi32>
    %32 = arith.cmpi ne, %30, %31 : vector<8x128xi32>
    %c0_i32_12 = arith.constant 0 : i32
    %33 = vector.broadcast %c0_i32_12 : i32 to vector<8x128xi32>
    %34 = arith.cmpi slt, %30, %33 : vector<8x128xi32>
    %c0_i32_13 = arith.constant 0 : i32
    %35 = arith.cmpi slt, %28, %c0_i32_13 : i32
    %36 = vector.broadcast %35 : i1 to vector<8x128xi1>
    %37 = vector.broadcast %36 : vector<8x128xi1> to vector<8x128xi1>
    %38 = arith.xori %34, %37 : vector<8x128xi1>
    %39 = arith.andi %38, %32 : vector<8x128xi1>
    %40 = vector.broadcast %28 : i32 to vector<8x128xi32>
    %41 = arith.addi %30, %40 : vector<8x128xi32>
    %42 = arith.select %39, %41, %30 : vector<8x128xi1>, vector<8x128xi32>
    %c2_i32 = arith.constant 2 : i32
    %43 = vector.broadcast %c2_i32 : i32 to vector<8x128xi32>
    %44 = arith.cmpi ne, %42, %43 : vector<8x128xi32>
    %45 = arith.mulf %2, %2 : vector<8x128xf32>
    %46 = math.cos %2 : vector<8x128xf32>
    %cst = arith.constant 2.000000e+00 : f32
    %47 = vector.broadcast %cst : f32 to vector<8x128xf32>
    %48 = arith.mulf %47, %46 : vector<8x128xf32>
    %cst_14 = arith.constant 2.000000e+00 : f32
    %49 = vector.broadcast %cst_14 : f32 to vector<8x128xf32>
    %50 = arith.subf %49, %48 : vector<8x128xf32>
    %51 = arith.select %44, %45, %50 : vector<8x128xi1>, vector<8x128xf32>
    %c0_15 = arith.constant 0 : index
    %c0_16 = arith.constant 0 : index
    %52 = vector.load %arg3[%c0_15, %c0_16] : memref<8x128xf32, #tpu.memory_space<vmem>>, vector<8x128xf32>
    tpu.vector_store %arg3[%c0_15, %c0_16], %51 {strides = array<i32>} : memref<8x128xf32, #tpu.memory_space<vmem>>, vector<8x128xf32>,
    return
  }
  func.func @transform_0(%arg0: i32) -> (i32, i32) {
    %c0_i32 = arith.constant 0 : i32
    %c0_i32_0 = arith.constant 0 : i32
    return %arg0, %c0_i32 : i32, i32
  }
  func.func @transform_1(%arg0: i32) -> (i32, i32) {
    %c0_i32 = arith.constant 0 : i32
    %c0_i32_0 = arith.constant 0 : i32
    return %arg0, %c0_i32 : i32, i32
  }
  func.func @transform_2(%arg0: i32) -> (i32, i32) {
    %c0_i32 = arith.constant 0 : i32
    %c0_i32_0 = arith.constant 0 : i32
    return %arg0, %c0_i32 : i32, i32
  }
}

</mosaic_0001>

<bundles_post_ra>
// kernel: tpu_custom_call.1
= control target key start
LH: loop header
LB: loop body
LE: loop exit
PB: predicated region body
PF: predicated region fallthrough
CT: control target
= control target key end

     0   :  { %7 = vsyncpa [#allocation3], 0  ;;  %s354_s0 = inlined_call_operand.hbm [shape: f32[8,128], index: 0, kind: input, shape index: {}]   ;;  %s355_s1 = inlined_call_operand.hbm [shape: f32[8,128], index: 1, kind: input, shape index: {}]   ;;  %s356_s2 = inlined_call_operand.hbm [shape: f32[8,128], index: 2, kind: output, shape index: {}]  }
   0x1   :  { %8 = vsyncpa [#allocation6], 0 }
   0x2   :  { %9 = vsyncpa [#allocation4], 0  ;;  %s271_s9 = smov [#allocation2]   ;;  %s272_s11 = smov [#allocation5]  }
   0x3   :  { %s16_s10 = sshll.u32 %s271_s9, 4  ;;  %s26_s12 = sshll.u32 %s272_s11, 4  ;;  %s17_s10 = int_to_ptr.vmem [resolvable:$true] %s16_s10  ;;  %s27_s12 = int_to_ptr.vmem [resolvable:$true] %s26_s12 }
   0x4   :  { %s199_s15 = scalar_lea.hbm %s354_s0, 128 }
   0x5   :  { %p200_p0 = scmp.ne.s32.totalorder %s354_s0, %s199_s15  ;;  %p203_p1 = scmp.lt.u32.totalorder %s199_s15, %s354_s0 }
   0x7   :  { %p205_p2 = pnand %p203_p1, %p200_p0 }
   0x9   :  { %208 = shalt.err (!%p205_p2)
}
   0xa   :  { %s209_s20 = scalar_lea.vmem %s17_s10, 128  ;;  %p214_p4 = scmp.lt.s32.totalorder %s17_s10, %s17_s10 }
   0xb   :  { %p210_p3 = scmp.ne.s32.totalorder %s17_s10, %s209_s20  ;;  %p215_p5 = scmp.lt.s32.totalorder %s209_s20, %s209_s20 }
   0xd   :  { %p216_p6 = por %p215_p5, %p214_p4 }
   0xf   :  { %p217_p7 = pnand %p216_p6, %p210_p3 }
  0x11   :  { %220 = shalt.err (!%p217_p7)
}
  0x12   :  { %19 = dma.hbm_to_vmem [thread:$0]  %s354_s0, 128, %s17_s10, [#allocation3]  }
  0x13   :  { %s221_s25 = scalar_lea.hbm %s355_s1, 128 }
  0x14   :  { %p222_p8 = scmp.ne.s32.totalorder %s355_s1, %s221_s25  ;;  %p225_p9 = scmp.lt.u32.totalorder %s221_s25, %s355_s1 }
  0x16   :  { %p227_p10 = pnand %p225_p9, %p222_p8 }
  0x18   :  { %230 = shalt.err (!%p227_p10)
}
  0x19   :  { %s231_s30 = scalar_lea.vmem %s27_s12, 128  ;;  %p236_p12 = scmp.lt.s32.totalorder %s27_s12, %s27_s12 }
  0x1a   :  { %p232_p11 = scmp.ne.s32.totalorder %s27_s12, %s231_s30  ;;  %p237_p13 = scmp.lt.s32.totalorder %s231_s30, %s231_s30 }
  0x1c   :  { %p238_p0 = por %p237_p13, %p236_p12 }
  0x1e   :  { %p239_p1 = pnand %p238_p0, %p232_p11 }
  0x20   :  { %242 = shalt.err (!%p239_p1)
}
  0x21   :  { %29 = dma.hbm_to_vmem [thread:$0]  %s355_s1, 128, %s27_s12, [#allocation6]  }
  0x22   :  { %265 = dma.done.wait [#allocation3], 128  }
  0x23   :  { %266 = vsyncadd [#allocation3], 4294967168 }
  0x24   :  { %267 = dma.done.wait [#allocation6], 128  }
  0x25   :  { %268 = vsyncadd [#allocation6], 4294967168  ;;  %v36_v0 = vld [vmem:[#allocation2] sm:$0xff]  ;;  %v37_v1 = vld [vmem:[#allocation5] sm:$0xff]  ;;  %v273_v14 = vmov 683565275  }
  0x26   :  { %v319_v2 = vsub.f32 %v36_v0, %v37_v1  ;;  %v274_v16 = vmov 2475754826   ;;  %v275_v18 = vmov 2131351028   ;;  %v276_v20 = vmov 2102212464  }
  0x27   :  { %v277_v22 = vmov 920167782   ;;  %v278_v29 = vmov 1326507024   ;;  %s279_s1 = smov [#allocation7]  }
  0x28   :  { %v58_v3 = vand.u32 2139095040, %v319_v2  ;;  %v55_v5 = vand.u32 2147483647, %v319_v2  ;;  %vm57_vm7 = vcmp.lt.s32.totalorder %v319_v2, 0  ;;  %vm147_vm12 = vweird.f32 %v319_v2  ;;  %s168_s4 = sshll.u32 %s279_s1, 4  ;;  %s169_s4 = int_to_ptr.vmem [resolvable:$true] %s168_s4 }
  0x29   :  { %s243_s5 = scalar_lea.vmem %s169_s4, 128  ;;  %p248_p3 = scmp.lt.s32.totalorder %s169_s4, %s169_s4 }
  0x2a   :  { %v59_v4 = vshrl.u32 %v58_v3, 23  ;;  %v62_v8 = vand.u32 8388607, %v55_v5  ;;  %vm56_vm8 = vcmp.le.f32.partialorder %v55_v5, 0.7853982  ;;  %p244_p2 = scmp.ne.s32.totalorder %s169_s4, %s243_s5  ;;  %p249_p4 = scmp.lt.s32.totalorder %s243_s5, %s243_s5 }
  0x2c   :  { %v178_v6 = vadd.s32 4294967169, %v59_v4  ;;  %v63_v11 = vor.u32 8388608, %v62_v8  ;;  %p250_p5 = por %p249_p4, %p248_p3 }
  0x2e   :  { %v65_v7 = vadd.s32 1, %v178_v6  ;;  %v103_v31 = vshll.u32 %v63_v11, 8  ;;  %p251_p6 = pnand %p250_p5, %p244_p2 }
  0x30   :  { %vm66_vm0 = vcmp.gt.s32.totalorder %v65_v7, 0 }
  0x31   :  { %v67_v9 = vsel %vm66_vm0, %v65_v7, 0 }
  0x32   :  { %v69_v10 = vand.u32 31, %v67_v9  ;;  %v68_v12 = vshrl.u32 %v67_v9, 5 }
  0x34   :  { %v70_v13 = vsub.s32 32, %v69_v10  ;;  %v72_v15 = vshll.u32 %v273_v14, %v69_v10  ;;  %v75_v17 = vshll.u32 %v274_v16, %v69_v10  ;;  %v78_v19 = vshll.u32 %v275_v18, %v69_v10 }
  0x35   :  { %v81_v21 = vshll.u32 %v276_v20, %v69_v10  ;;  %v84_v23 = vshll.u32 %v277_v22, %v69_v10  ;;  %vm87_vm1 = vcmp.lt.s32.totalorder %v68_v12, 1  ;;  %vm90_vm2 = vcmp.lt.s32.totalorder %v68_v12, 4 }
  0x36   :  { %v71_v24 = vshrl.u32 %v273_v14, %v70_v13  ;;  %v73_v25 = vshrl.u32 %v274_v16, %v70_v13  ;;  %v76_v26 = vshrl.u32 %v275_v18, %v70_v13  ;;  %v79_v27 = vshrl.u32 %v276_v20, %v70_v13 }
  0x37   :  { %v82_v28 = vshrl.u32 %v277_v22, %v70_v13  ;;  %v85_v30 = vshrl.u32 %v278_v29, %v70_v13  ;;  %vm88_vm3 = vcmp.lt.s32.totalorder %v68_v12, 2  ;;  %vm89_vm4 = vcmp.lt.s32.totalorder %v68_v12, 3 }
  0x38   :  { %v74_v32 = vor.u32 %v73_v25, %v72_v15  ;;  %v77_v33 = vor.u32 %v76_v26, %v75_v17  ;;  %v80_v34 = vor.u32 %v79_v27, %v78_v19  ;;  %v39_v22 = vlaneseq }
  0x39   :  { %v83_v35 = vor.u32 %v82_v28, %v81_v21  ;;  %v86_v36 = vor.u32 %v85_v30, %v84_v23 }
  0x3a   :  { %v91_v37 = vsel %vm87_vm1, %v71_v24, %v74_v32  ;;  %v92_v38 = vsel %vm90_vm2, %v80_v34, 2102212464  ;;  %v95_v39 = vsel %vm87_vm1, %v74_v32, %v77_v33  ;;  %v99_v40 = vsel %vm87_vm1, %v77_v33, %v80_v34 }
  0x3b   :  { %v93_v41 = vsel %vm89_vm4, %v77_v33, %v92_v38  ;;  %v96_v42 = vsel %vm90_vm2, %v83_v35, 920167782  ;;  %v100_v43 = vsel %vm90_vm2, %v86_v36, 1326507024  ;;  %v40_v25 = vand.u32 127, %v39_v22 }
  0x3c   :  { %v97_v44 = vsel %vm89_vm4, %v80_v34, %v96_v42  ;;  %v101_v45 = vsel %vm89_vm4, %v83_v35, %v100_v43  ;;  %v94_v46 = vsel %vm88_vm3, %v91_v37, %v93_v41  ;;  %v54_v33 = vmul.f32 %v319_v2, %v319_v2 }
  0x3d   :  { %v98_v47 = vsel %vm88_vm3, %v95_v39, %v97_v44  ;;  %v102_v48 = vsel %vm88_vm3, %v99_v40, %v101_v45  ;;  %v110_v53 = vmul.u32 %v103_v31, %v94_v46  ;;  %v45_v29 = vand.u32 7, %v40_v25 }
  0x3e   :  { %v325_v49 = vmul.u32.u64.low %v103_v31, %v102_v48  ;;  %v326_v50 = vmul.u32.u64.high %v103_v31, %v102_v48, %v325_v49  ;;  %v328_v51 = vmul.u32.u64.low %v103_v31, %v98_v47  ;;  %v329_v52 = vmul.u32.u64.high %v103_v31, %v98_v47, %v328_v51 }
  0x3f   :  { %vm53_vm13 = vcmp.ne.s32.totalorder %v45_v29, 2 }
  0x40   :  { %vm112_vm5 = vc.u32 %v326_v50, %v328_v51  ;;  %v113_v54 = vadd.s32 1, %v329_v52  ;;  %v111_v1 = vadd.s32 %v328_v51, %v326_v50 }
  0x42   :  { %v114_v55 = vsel %vm112_vm5, %v113_v54, %v329_v52 }
  0x43   :  { %v115_v56 = vadd.s32 %v114_v55, %v110_v53 }
  0x45   :  { %v116_v57 = vadd.s32 536870912, %v115_v56 }
  0x47   :  { %v117_v58 = vshrl.u32 %v116_v57, 30 }
  0x49   :  { %v118_v59 = vshll.u32 %v117_v58, 30  ;;  %v141_v17 = vsub.s32 4, %v117_v58 }
  0x4b   :  { %v119_v60 = vsub.s32 %v115_v56, %v118_v59  ;;  %v142_v20 = vsel %vm57_vm7, %v141_v17, %v117_v58 }
  0x4c   :  { %v144_v21 = vsel %vm56_vm8, 0, %v142_v20 }
  0x4d   :  { %v121_v61 = vsub.s32 0, %v119_v60  ;;  %v148_v23 = vand.u32 3, %v144_v21 }
  0x4f   :  { %v179_v62 = vmin.u32 %v121_v61, %v119_v60  ;;  %vm153_vm9 = vcmp.eq.s32.totalorder %v148_v23, 2  ;;  %vm150_vm10 = vcmp.eq.s32.totalorder %v148_v23, 0  ;;  %vm149_vm11 = vcmp.lt.s32.totalorder %v148_v23, 2 }
  0x51   :  { %v123_v63 = vclz %v179_v62 }
  0x53   :  { %v180_v0 = vadd.s32 4294967294, %v123_v63 }
  0x55   :  { %vm181_vm6 = vcmp.lt.s32.totalorder %v180_v0, 0 }
  0x56   :  { %v126_v3 = vsel %vm181_vm6, 0, %v180_v0 }
  0x57   :  { %v127_v4 = vsub.s32 32, %v126_v3  ;;  %v128_v6 = vshll.u32 %v119_v60, %v126_v3  ;;  %v131_v7 = vsub.s32 4294967266, %v126_v3 }
  0x59   :  { %v129_v8 = vshrl.u32 %v111_v1, %v127_v4  ;;  %v132_v9 = vadd.s32 127, %v131_v7 }
  0x5b   :  { %v130_v10 = vor.u32 %v129_v8, %v128_v6  ;;  %v133_v11 = vshll.u32 %v132_v9, 23 }
  0x5d   :  { %v134_v12 = vor.u32 4788187, %v133_v11  ;;  %v137_v13 = vcvt.s32.f32 %v130_v10 }
  0x5f   :  { %v135_v14 = vand.u32 2147483647, %v134_v12 }
  0x61   :  { %v138_v15 = vmul.f32 %v137_v13, %v135_v14 }
  0x63   :  { %v139_v16 = vxor.u32 2147483648, %v138_v15 }
  0x65   :  { %v140_v18 = vsel %vm57_vm7, %v139_v16, %v138_v15 }
  0x66   :  { %v143_v19 = vsel %vm56_vm8, %v319_v2, %v140_v18 }
  0x67   :  { %195 = vcosq.f32 %v143_v19 }
  0x68   :  { %197 = vsinq.f32 %v143_v19 }
  0x71   :  { %v196_v24 = vpop.eup %195 }
  0x72   :  { %v198_v26 = vpop.eup %197  ;;  %v154_v27 = vxor.u32 2147483648, %v196_v24 }
  0x73   :  { %v151_v28 = vxor.u32 2147483648, %v198_v26 }
  0x74   :  { %v155_v5 = vsel %vm153_vm9, %v154_v27, %v198_v26 }
  0x75   :  { %v152_v30 = vsel %vm150_vm10, %v196_v24, %v151_v28 }
  0x76   :  { %v156_v31 = vsel %vm149_vm11, %v152_v30, %v155_v5 }
  0x77   :  { %v157_v32 = vsel %vm147_vm12, nan, %v156_v31 }
  0x78   :  { %v158_v34 = vmul.f32 2.0, %v157_v32 }
  0x7a   :  { %v159_v35 = vsub.f32 2.0, %v158_v34 }
  0x7c   :  { %v160_v36 = vsel %vm53_vm13, %v54_v33, %v159_v35 }
  0x7d   :  { %161 = vst [vmem:[#allocation7] sm:$0xff] %v160_v36 }
  0x7e   :  { %254 = shalt.err (!%p251_p6)
}
  0x7f   :  { %s255_s8 = scalar_lea.hbm %s356_s2, 128 }
  0x80   :  { %p256_p7 = scmp.ne.s32.totalorder %s356_s2, %s255_s8  ;;  %p259_p8 = scmp.lt.u32.totalorder %s255_s8, %s356_s2 }
  0x82   :  { %p261_p9 = pnand %p259_p8, %p256_p7 }
  0x84   :  { %264 = shalt.err (!%p261_p9)
}
  0x85   :  { %171 = dma.vmem_to_hbm [thread:$0]  %s169_s4, 128, %s356_s2, [#allocation4]  }
  0x86   :  { %269 = dma.done.wait [#allocation4], 128  }
  0x87   :  { %270 = vsyncadd [#allocation4], 4294967168 }
  0x88   :  { %175 = vsyncpa [#allocation3], 1 }
  0x89   :  { %176 = vsyncpa [#allocation6], 1 }
  0x8a   :  { %177 = vsyncpa [#allocation4], 1 }

</bundles_post_ra>
